<compile_context>
chip_gen: v5e
topology: v5e:2x2
jax: 0.10.0
libtpu: 0.0.40
codegen_flags: <defaults>
</compile_context>

<pallas_src>
import functools

import jax
import jax.numpy as jnp
from jax.experimental import pallas as pl
from jax.experimental.pallas import tpu as pltpu


_FUSED_VMEM_BUDGET = 8 * 1024 * 1024   # fused path only below this (and N<=256)
_TILE_CANDIDATES = (2048, 1024, 512, 256, 128, 64, 32, 16, 8)


def _round_up(x, m):
    return ((x + m - 1) // m) * m


# ---------------------------------------------------------------------------
# Capability / hardware probes (plain Python, evaluated once at import time).
# ---------------------------------------------------------------------------

def _probe_single_buffer():
    """Check pipeline_mode=pl.Buffered(1) compiles, runs and is correct."""
    try:
        def k(a_ref, b_ref, o_ref):
            o_ref[...] = a_ref[...] + b_ref[...]

        a = jnp.arange(16 * 128, dtype=jnp.float32).reshape(16, 128)
        b = jnp.ones((8, 128), jnp.float32)
        out = pl.pallas_call(
            k,
            out_shape=jax.ShapeDtypeStruct((16, 128), jnp.float32),
            grid_spec=pltpu.PrefetchScalarGridSpec(
                num_scalar_prefetch=0,
                grid=(2,),
                in_specs=[
                    pl.BlockSpec((8, 128), lambda i: (i, 0)),
                    pl.BlockSpec((8, 128), lambda i: (0, 0),
                                 pipeline_mode=pl.Buffered(1)),
                ],
                out_specs=pl.BlockSpec((8, 128), lambda i: (i, 0)),
            ),
        )(a, b)
        out = jax.block_until_ready(out)
        return bool(jnp.allclose(out, a + jnp.tile(b, (2, 1))))
    except Exception:
        return False


_SINGLE_BUFFER_OK = _probe_single_buffer()
_INV_BUFS = 1 if _SINGLE_BUFFER_OK else 2     # buffers charged per invariant input


def _invariant_spec(block_shape, index_map):
    """BlockSpec for a grid-invariant input (same block every grid step)."""
    if _SINGLE_BUFFER_OK:
        return pl.BlockSpec(block_shape, index_map, pipeline_mode=pl.Buffered(1))
    return pl.BlockSpec(block_shape, index_map)


def _vmem_budgets():
    """(streaming working-set budget, vmem_limit_bytes), generation-aware."""
    cap = 64 * 1024 * 1024                     # conservative default (v7x-safe)
    try:
        cap = int(pltpu.get_tpu_info().vmem_capacity_bytes)
    except Exception:
        pass
    if cap >= 100 * 1024 * 1024:               # v5e / v6e: 128 MiB physical VMEM
        return 88 * 1024 * 1024, 100 * 1024 * 1024
    return 40 * 1024 * 1024, 48 * 1024 * 1024  # v7x: 64 MiB physical VMEM


# ---------------------------------------------------------------------------
# Tile selection
# ---------------------------------------------------------------------------

def _divisor_tiles(n_pad):
    return [t for t in _TILE_CANDIDATES if t <= n_pad and n_pad % t == 0]


def _pick_aggregate_tiles(n_pad, out_f_pad, adj_bytes, budget):
    """Choose how to stream adj @ support.

    Returns ("resident", row_tile, n_pad): support fully resident in VMEM, or
            ("ktiled",   row_tile, k_tile): support streamed along K with an
                                            f32 accumulator scratch.
    """
    row_tiles = _divisor_tiles(n_pad)
    # K tiles are the lane dim of the adj block -> must stay 128-dense.
    k_tiles = [t for t in row_tiles if t % 128 == 0]

    # (1) resident support (single-buffered when supported).
    for rt in row_tiles:
        need = (2 * rt * n_pad * adj_bytes            # adj row tile (double buf)
                + _INV_BUFS * n_pad * out_f_pad * 4   # resident support
                + 2 * rt * out_f_pad * 4              # output tile (double buf)
                + _INV_BUFS * out_f_pad * 4)          # bias row
        if need <= budget:
            return "resident", rt, n_pad

    # (2) K-tiled fallback for very large N (support no longer fits VMEM).
    for rt in row_tiles:
        for kt in k_tiles:
            need = (2 * rt * kt * adj_bytes           # adj tile
                    + 2 * kt * out_f_pad * 4          # support K tile
                    + rt * out_f_pad * 4              # f32 accumulator scratch
                    + 2 * rt * out_f_pad * 4          # output tile
                    + _INV_BUFS * out_f_pad * 4)
            if need <= budget:
                return "ktiled", rt, kt
    return "ktiled", 8, 128                            # last resort (huge out_f)


def _pick_support_tile(n_pad, in_f, out_f_pad, budget):
    """Row tile for the (cheap) X @ W pass, chosen independently."""
    for rt in _divisor_tiles(n_pad):
        need = 4 * (2 * rt * in_f
                    + _INV_BUFS * in_f * out_f_pad
                    + 2 * rt * out_f_pad)
        if need <= budget:
            return rt
    return 8


# ---------------------------------------------------------------------------
# Kernels
# ---------------------------------------------------------------------------

def _fused_bias_kernel(x_ref, w_ref, adj_ref, b_ref, o_ref):
    support = jnp.dot(x_ref[...], w_ref[...], preferred_element_type=jnp.float32)
    out = jnp.dot(adj_ref[...], support, preferred_element_type=jnp.float32)
    o_ref[...] = (out + b_ref[...]).astype(o_ref.dtype)


def _fused_nobias_kernel(x_ref, w_ref, adj_ref, o_ref):
    support = jnp.dot(x_ref[...], w_ref[...], preferred_element_type=jnp.float32)
    o_ref[...] = jnp.dot(adj_ref[...], support,
                         preferred_element_type=jnp.float32).astype(o_ref.dtype)


def _support_kernel(x_ref, w_ref, s_ref):
    s_ref[...] = jnp.dot(x_ref[...], w_ref[...],
                         preferred_element_type=jnp.float32).astype(s_ref.dtype)


def _agg_bias_kernel(adj_ref, s_ref, b_ref, o_ref):
    out = jnp.dot(adj_ref[...], s_ref[...], preferred_element_type=jnp.float32)
    o_ref[...] = (out + b_ref[...]).astype(o_ref.dtype)


def _agg_nobias_kernel(adj_ref, s_ref, o_ref):
    o_ref[...] = jnp.dot(adj_ref[...], s_ref[...],
                         preferred_element_type=jnp.float32).astype(o_ref.dtype)


def _agg_ktiled_bias_kernel(adj_ref, s_ref, b_ref, o_ref, acc_ref):
    @pl.when(pl.program_id(1) == 0)
    def _():
        acc_ref[...] = jnp.zeros_like(acc_ref)

    acc_ref[...] += jnp.dot(adj_ref[...], s_ref[...],
                            preferred_element_type=jnp.float32)

    @pl.when(pl.program_id(1) == pl.num_programs(1) - 1)
    def _():
        o_ref[...] = (acc_ref[...] + b_ref[...]).astype(o_ref.dtype)


def _agg_ktiled_nobias_kernel(adj_ref, s_ref, o_ref, acc_ref):
    @pl.when(pl.program_id(1) == 0)
    def _():
        acc_ref[...] = jnp.zeros_like(acc_ref)

    acc_ref[...] += jnp.dot(adj_ref[...], s_ref[...],
                            preferred_element_type=jnp.float32)

    @pl.when(pl.program_id(1) == pl.num_programs(1) - 1)
    def _():
        o_ref[...] = acc_ref[...].astype(o_ref.dtype)


# ---------------------------------------------------------------------------
# Wrapper
# ---------------------------------------------------------------------------

@functools.partial(
    jax.jit,
    static_argnames=("force_streaming", "force_ktiled", "stream_adj_bf16"))
def graph_convolution(x, adj, weight, bias=None, *,
                      force_streaming=False, force_ktiled=False,
                      stream_adj_bf16=False):
    """Pallas implementation of GraphConvolutionLayer.forward.

    out = adj @ (x @ weight) [+ bias]
    """
    n, in_f = x.shape
    in_f_w, out_f = weight.shape
    assert in_f_w == in_f
    assert adj.shape == (n, n)

    f32 = jnp.float32
    out_f_pad = _round_up(out_f, 128)          # lane-dense output width
    has_bias = bias is not None

    # Note: weight is held resident in VMEM; in_features is assumed to fit
    # (true for typical GCN layer widths).
    w_p = weight.astype(f32)
    if out_f_pad != out_f:
        w_p = jnp.pad(w_p, ((0, 0), (0, out_f_pad - out_f)))
    if has_bias:
        b_row = bias.astype(f32)
        if out_f_pad != out_f:
            b_row = jnp.pad(b_row, (0, out_f_pad - out_f))
        b_row = b_row.reshape(1, out_f_pad)

    stream_budget, vmem_limit = _vmem_budgets()

    # ----------------------- fused single-block path -------------------------
    n8 = _round_up(n, 8)
    fused_bytes = 4 * (n8 * in_f + in_f * out_f_pad + n8 * n8
                       + out_f_pad + n8 * out_f_pad)
    use_fused = (not force_streaming and not force_ktiled
                 and n8 <= 256 and fused_bytes <= _FUSED_VMEM_BUDGET)

    if use_fused:
        n_pad = n8
        x_p = x.astype(f32)
        adj_p = adj.astype(f32)
        if n_pad != n:
            x_p = jnp.pad(x_p, ((0, n_pad - n), (0, 0)))
            adj_p = jnp.pad(adj_p, ((0, n_pad - n), (0, n_pad - n)))

        in_specs = [
            pl.BlockSpec((n_pad, in_f), lambda i: (0, 0)),
            pl.BlockSpec((in_f, out_f_pad), lambda i: (0, 0)),
            pl.BlockSpec((n_pad, n_pad), lambda i: (0, 0)),
        ]
        operands = [x_p, w_p, adj_p]
        kernel = _fused_nobias_kernel
        if has_bias:
            in_specs.append(pl.BlockSpec((1, out_f_pad), lambda i: (0, 0)))
            operands.append(b_row)
            kernel = _fused_bias_kernel

        flops = 2 * n_pad * in_f * out_f_pad + 2 * n_pad * n_pad * out_f_pad
        out_p = pl.pallas_call(
            kernel,
            out_shape=jax.ShapeDtypeStruct((n_pad, out_f_pad), f32),
            grid_spec=pltpu.PrefetchScalarGridSpec(
                num_scalar_prefetch=0,
                grid=(1,),
                in_specs=in_specs,
                out_specs=pl.BlockSpec((n_pad, out_f_pad), lambda i: (0, 0)),
            ),
            compiler_params=pltpu.CompilerParams(
                dimension_semantics=("arbitrary",),
                vmem_limit_bytes=vmem_limit),
            cost_estimate=pl.CostEstimate(
                flops=flops, transcendentals=0, bytes_accessed=fused_bytes),
        )(*operands)
        return out_p[:n, :out_f].astype(x.dtype)

    # --------------------------- streaming path -------------------------------
    # Lane-dense adj stream: pad N up to a multiple of 128; tiles divide n_pad
    # exactly, so when N is already a 128-multiple no padded adj copy is made.
    n_pad = _round_up(n, 128)
    x_p = x.astype(f32)
    adj_p = adj.astype(f32)
    if n_pad != n:
        x_p = jnp.pad(x_p, ((0, n_pad - n), (0, 0)))
        adj_p = jnp.pad(adj_p, ((0, n_pad - n), (0, n_pad - n)))

    # Opt-in bf16 adj streaming (halves adj HBM bytes; changes numerics).
    adj_stream = adj_p.astype(jnp.bfloat16) if stream_adj_bf16 else adj_p
    adj_bytes = 2 if stream_adj_bf16 else 4

    # (1) support = x @ w, tiled over rows with its own (larger) row tile.
    s_tile = _pick_support_tile(n_pad, in_f, out_f_pad, stream_budget)
    support = pl.pallas_call(
        _support_kernel,
        out_shape=jax.ShapeDtypeStruct((n_pad, out_f_pad), f32),
        grid_spec=pltpu.PrefetchScalarGridSpec(
            num_scalar_prefetch=0,
            grid=(n_pad // s_tile,),
            in_specs=[
                pl.BlockSpec((s_tile, in_f), lambda i: (i, 0)),
                _invariant_spec((in_f, out_f_pad), lambda i: (0, 0)),
            ],
            out_specs=pl.BlockSpec((s_tile, out_f_pad), lambda i: (i, 0)),
        ),
        compiler_params=pltpu.CompilerParams(
            dimension_semantics=("parallel",),
            vmem_limit_bytes=vmem_limit),
        cost_estimate=pl.CostEstimate(
            flops=2 * n_pad * in_f * out_f_pad,
            transcendentals=0,
            bytes_accessed=4 * (n_pad * in_f + in_f * out_f_pad
                                + n_pad * out_f_pad)),
    )(x_p, w_p)

    # (2) out = adj @ support (+ bias), adj streamed in large row tiles.
    mode, row_tile, k_tile = _pick_aggregate_tiles(
        n_pad, out_f_pad, adj_bytes, stream_budget)
    if force_ktiled:   # testing hook: exercise the K-tiled accumulator path
        mode, row_tile, k_tile = "ktiled", 64, 128

    agg_flops = 2 * n_pad * n_pad * out_f_pad
    agg_bytes = (adj_bytes * n_pad * n_pad
                 + 4 * n_pad * out_f_pad       # support read
                 + 4 * n_pad * out_f_pad       # output write
                 + 4 * out_f_pad)              # bias

    if mode == "resident":
        in_specs = [
            pl.BlockSpec((row_tile, n_pad), lambda i: (i, 0)),
            _invariant_spec((n_pad, out_f_pad), lambda i: (0, 0)),
        ]
        operands = [adj_stream, support]
        kernel = _agg_nobias_kernel
        if has_bias:
            in_specs.append(_invariant_spec((1, out_f_pad), lambda i: (0, 0)))
            operands.append(b_row)
            kernel = _agg_bias_kernel

        out_p = pl.pallas_call(
            kernel,
            out_shape=jax.ShapeDtypeStruct((n_pad, out_f_pad), f32),
            grid_spec=pltpu.PrefetchScalarGridSpec(
                num_scalar_prefetch=0,
                grid=(n_pad // row_tile,),
                in_specs=in_specs,
                out_specs=pl.BlockSpec((row_tile, out_f_pad), lambda i: (i, 0)),
            ),
            compiler_params=pltpu.CompilerParams(
                dimension_semantics=("parallel",),
                vmem_limit_bytes=vmem_limit),
            cost_estimate=pl.CostEstimate(
                flops=agg_flops, transcendentals=0, bytes_accessed=agg_bytes),
        )(*operands)
    else:
        # K-tiled fallback: 2-D grid (row tiles "parallel", K "arbitrary")
        # with an f32 accumulator scratch.
        in_specs = [
            pl.BlockSpec((row_tile, k_tile), lambda i, k: (i, k)),
            pl.BlockSpec((k_tile, out_f_pad), lambda i, k: (k, 0)),
        ]
        operands = [adj_stream, support]
        kernel = _agg_ktiled_nobias_kernel
        if has_bias:
            in_specs.append(_invariant_spec((1, out_f_pad), lambda i, k: (0, 0)))
            operands.append(b_row)
            kernel = _agg_ktiled_bias_kernel

        out_p = pl.pallas_call(
            kernel,
            out_shape=jax.ShapeDtypeStruct((n_pad, out_f_pad), f32),
            grid_spec=pltpu.PrefetchScalarGridSpec(
                num_scalar_prefetch=0,
                grid=(n_pad // row_tile, n_pad // k_tile),
                in_specs=in_specs,
                out_specs=pl.BlockSpec((row_tile, out_f_pad),
                                       lambda i, k: (i, 0)),
                scratch_shapes=[pltpu.VMEM((row_tile, out_f_pad), jnp.float32)],
            ),
            compiler_params=pltpu.CompilerParams(
                dimension_semantics=("parallel", "arbitrary"),
                vmem_limit_bytes=vmem_limit),
            cost_estimate=pl.CostEstimate(
                flops=agg_flops, transcendentals=0, bytes_accessed=agg_bytes),
        )(*operands)

    return out_p[:n, :out_f].astype(x.dtype)


# ---------------------------------------------------------------------------
# Self-test
# ---------------------------------------------------------------------------

if __name__ == "__main__":
    def make_problem(n_nodes, in_features, out_features, seed=0):
        key = jax.random.PRNGKey(seed)
        kx, kadj, kw, kb = jax.random.split(key, 4)
        x = jax.random.normal(kx, (n_nodes, in_features), dtype=jnp.float32)
        a = jax.random.uniform(kadj, (n_nodes, n_nodes), dtype=jnp.float32)
        adj = (a + a.T) / (2.0 * n_nodes)
        # reset_parameters(): uniform(-stdv, stdv), stdv = 1/sqrt(out_features)
        stdv = 1.0 / jnp.sqrt(jnp.float32(out_features))
        w = jax.random.uniform(kw, (in_features, out_features),
                               dtype=jnp.float32, minval=-stdv, maxval=stdv)
        b = jax.random.uniform(kb, (out_features,), dtype=jnp.float32,
                               minval=-stdv, maxval=stdv)
        return x, adj, w, b

    # --- Problem A: 128 nodes, 32 -> 32 (module-consistent small shapes) ---
    x, adj, w, b = make_problem(128, 32, 32)
    ref = adj @ (x @ w)
    ref_b = ref + b

    out = jax.block_until_ready(graph_convolution(x, adj, w))          # fused, no bias
    assert out.shape == (128, 32)
    assert jnp.allclose(out, ref, atol=1e-4, rtol=1e-4), "A: fused no-bias mismatch"

    out_b = jax.block_until_ready(graph_convolution(x, adj, w, b))     # fused, bias
    assert jnp.allclose(out_b, ref_b, atol=1e-4, rtol=1e-4), "A: fused bias mismatch"

    out_s = jax.block_until_ready(
        graph_convolution(x, adj, w, b, force_streaming=True))         # streaming resident
    assert jnp.allclose(out_s, ref_b, atol=1e-4, rtol=1e-4), "A: streaming mismatch"

    out_bf = jax.block_until_ready(
        graph_convolution(x, adj, w, None, force_streaming=True,
                          stream_adj_bf16=True))                       # opt-in bf16 adj
    assert jnp.allclose(out_bf, ref, atol=5e-3, rtol=5e-3), "A: bf16 stream mismatch"

    # --- Problem B: ragged N + non-128 out_f (exercise padding + K-tiling) ---
    x2, adj2, w2, b2 = make_problem(200, 48, 96, seed=0)
    ref2 = adj2 @ (x2 @ w2)
    ref2_b = ref2 + b2

    out2_s = jax.block_until_ready(
        graph_convolution(x2, adj2, w2, b2, force_streaming=True))     # resident, padded
    assert out2_s.shape == (200, 96)
    assert jnp.allclose(out2_s, ref2_b, atol=1e-4, rtol=1e-4), "B: streaming mismatch"

    out2_k = jax.block_until_ready(
        graph_convolution(x2, adj2, w2, None, force_ktiled=True))      # K-tiled accumulate
    assert jnp.allclose(out2_k, ref2, atol=1e-4, rtol=1e-4), "B: ktiled mismatch"

    print("KERNEL_OK")
</pallas_src>

<mosaic_0001>
module attributes {stable_mosaic.version = 11 : i64} {
  func.func @k(%arg0: i32, %arg1: memref<8x128xf32, #tpu.memory_space<vmem>>, %arg2: memref<8x128xf32, #tpu.memory_space<vmem>>, %arg3: memref<8x128xf32, #tpu.memory_space<vmem>>) attributes {dimension_semantics = [#tpu.dimension_semantics<arbitrary>], iteration_bounds = array<i64: 2>, scalar_prefetch = 0 : i64, scratch_operands = 0 : i64, tpu.core_type = #tpu.core_type<tc>, window_params = [{transform_indices = @transform_0, window_bounds = array<i64: 8, 128>}, {pipeline_mode = #tpu.pipeline_mode<synchronous>, transform_indices = @transform_1, window_bounds = array<i64: 8, 128>}, {transform_indices = @transform_2, window_bounds = array<i64: 8, 128>}]} {
    %c0 = arith.constant 0 : index
    %c0_0 = arith.constant 0 : index
    %0 = vector.load %arg1[%c0, %c0_0] : memref<8x128xf32, #tpu.memory_space<vmem>>, vector<8x128xf32>
    %c0_1 = arith.constant 0 : index
    %c0_2 = arith.constant 0 : index
    %1 = vector.load %arg2[%c0_1, %c0_2] : memref<8x128xf32, #tpu.memory_space<vmem>>, vector<8x128xf32>
    %2 = arith.addf %0, %1 : vector<8x128xf32>
    %c0_3 = arith.constant 0 : index
    %c0_4 = arith.constant 0 : index
    %3 = vector.load %arg3[%c0_3, %c0_4] : memref<8x128xf32, #tpu.memory_space<vmem>>, vector<8x128xf32>
    tpu.vector_store %arg3[%c0_3, %c0_4], %2 {strides = array<i32>} : memref<8x128xf32, #tpu.memory_space<vmem>>, vector<8x128xf32>,
    return
  }
  func.func @transform_0(%arg0: i32) -> (i32, i32) {
    %c0_i32 = arith.constant 0 : i32
    %c0_i32_0 = arith.constant 0 : i32
    return %arg0, %c0_i32 : i32, i32
  }
  func.func @transform_1(%arg0: i32) -> (i32, i32) {
    %c0_i32 = arith.constant 0 : i32
    %c0_i32_0 = arith.constant 0 : i32
    %c0_i32_1 = arith.constant 0 : i32
    return %c0_i32, %c0_i32_0 : i32, i32
  }
  func.func @transform_2(%arg0: i32) -> (i32, i32) {
    %c0_i32 = arith.constant 0 : i32
    %c0_i32_0 = arith.constant 0 : i32
    return %arg0, %c0_i32 : i32, i32
  }
}

module attributes {stable_mosaic.version = 11 : i64} {
  func.func @_fused_nobias_kernel(%arg0: i32, %arg1: memref<128x32xf32, #tpu.memory_space<vmem>>, %arg2: memref<32x128xf32, #tpu.memory_space<vmem>>, %arg3: memref<128x128xf32, #tpu.memory_space<vmem>>, %arg4: memref<128x128xf32, #tpu.memory_space<vmem>>) attributes {dimension_semantics = [#tpu.dimension_semantics<arbitrary>], iteration_bounds = array<i64: 1>, scalar_prefetch = 0 : i64, scratch_operands = 0 : i64, tpu.core_type = #tpu.core_type<tc>, window_params = [{pipeline_mode = #tpu.pipeline_mode<synchronous>, transform_indices = @transform_0, window_bounds = array<i64: 128, 32>}, {pipeline_mode = #tpu.pipeline_mode<synchronous>, transform_indices = @transform_1, window_bounds = array<i64: 32, 128>}, {pipeline_mode = #tpu.pipeline_mode<synchronous>, transform_indices = @transform_2, window_bounds = array<i64: 128, 128>}, {pipeline_mode = #tpu.pipeline_mode<synchronous>, transform_indices = @transform_3, window_bounds = array<i64: 128, 128>}]} {
    %c0 = arith.constant 0 : index
    %c0_0 = arith.constant 0 : index
    %0 = vector.load %arg1[%c0, %c0_0] : memref<128x32xf32, #tpu.memory_space<vmem>>, vector<128x32xf32>
    %c0_1 = arith.constant 0 : index
    %c0_2 = arith.constant 0 : index
    %1 = vector.load %arg2[%c0_1, %c0_2] : memref<32x128xf32, #tpu.memory_space<vmem>>, vector<32x128xf32>
    %cst = arith.constant dense<0.000000e+00> : vector<128x128xf32>
    %2 = tpu.matmul %0, %1, %cst {dimension_numbers = #tpu.dot_dimension_numbers<[1], [0], [0], [1], [0, 0, 1, 1], [], []>} : vector<128x32xf32>, vector<32x128xf32>, vector<128x128xf32> -> vector<128x128xf32>
    %c0_3 = arith.constant 0 : index
    %c0_4 = arith.constant 0 : index
    %3 = vector.load %arg3[%c0_3, %c0_4] : memref<128x128xf32, #tpu.memory_space<vmem>>, vector<128x128xf32>
    %cst_5 = arith.constant dense<0.000000e+00> : vector<128x128xf32>
    %4 = tpu.matmul %3, %2, %cst_5 {dimension_numbers = #tpu.dot_dimension_numbers<[1], [0], [0], [1], [0, 0, 1, 1], [], []>} : vector<128x128xf32>, vector<128x128xf32>, vector<128x128xf32> -> vector<128x128xf32>
    %c0_6 = arith.constant 0 : index
    %c0_7 = arith.constant 0 : index
    %5 = vector.load %arg4[%c0_6, %c0_7] : memref<128x128xf32, #tpu.memory_space<vmem>>, vector<128x128xf32>
    tpu.vector_store %arg4[%c0_6, %c0_7], %4 {strides = array<i32>} : memref<128x128xf32, #tpu.memory_space<vmem>>, vector<128x128xf32>,
    return
  }
  func.func @transform_0(%arg0: i32) -> (i32, i32) {
    %c0_i32 = arith.constant 0 : i32
    %c0_i32_0 = arith.constant 0 : i32
    %c0_i32_1 = arith.constant 0 : i32
    return %c0_i32, %c0_i32_0 : i32, i32
  }
  func.func @transform_1(%arg0: i32) -> (i32, i32) {
    %c0_i32 = arith.constant 0 : i32
    %c0_i32_0 = arith.constant 0 : i32
    %c0_i32_1 = arith.constant 0 : i32
    return %c0_i32, %c0_i32_0 : i32, i32
  }
  func.func @transform_2(%arg0: i32) -> (i32, i32) {
    %c0_i32 = arith.constant 0 : i32
    %c0_i32_0 = arith.constant 0 : i32
    %c0_i32_1 = arith.constant 0 : i32
    return %c0_i32, %c0_i32_0 : i32, i32
  }
  func.func @transform_3(%arg0: i32) -> (i32, i32) {
    %c0_i32 = arith.constant 0 : i32
    %c0_i32_0 = arith.constant 0 : i32
    %c0_i32_1 = arith.constant 0 : i32
    return %c0_i32, %c0_i32_0 : i32, i32
  }
}

</mosaic_0001>

<bundles_post_ra>
// kernel: tpu_custom_call.1
= control target key start
LH: loop header
LB: loop body
LE: loop exit
PB: predicated region body
PF: predicated region fallthrough
CT: control target
= control target key end

     0   :  { %7 = vsyncpa [#allocation3], 0  ;;  %s633_s0 = inlined_call_operand.hbm [shape: f32[16,128], index: 0, kind: input, shape index: {}]   ;;  %s634_s1 = inlined_call_operand.hbm [shape: f32[8,128], index: 1, kind: input, shape index: {}]   ;;  %s635_s2 = inlined_call_operand.hbm [shape: f32[16,128], index: 2, kind: output, shape index: {}]  }
   0x1   :  { %9 = vsyncpa [#allocation3 + $0x1], 0 }
   0x2   :  { %10 = vsyncpa [#allocation6], 0 }
   0x3   :  { %11 = vsyncpa [#allocation4], 0 }
   0x4   :  { %13 = vsyncpa [#allocation4 + $0x1], 0  ;;  %s495_s9 = smov 0   ;;  %s497_s10 = smov 0  }
   0x5   :  { %s499_s11 = smov 0   ;;  %s501_s12 = smov 0  }
   0x6 LB: > { %s516_s13 = sadd.s32 4294967295, %s477_s12   ;;  %s276_s14 = sadd.s32 4294967294, %s477_s12   ;;  %s477_s12 = sphi %s501_s12, %s645_s12   ;;  %s473_s11 = sphi %s499_s11, %s644_s11   ;;  %s469_s10 = sphi %s497_s10, %s643_s10   ;;  %s465_s9 = sphi %s495_s9, %s642_s9  }
   0x7   : > { %p39_p0 = scmp.ne.s32.totalorder %s469_s10, %s465_s9  ;;  %p40_p1 = scmp.eq.s32.totalorder %s516_s13, 0 }
   0x8   : > { %p84_p2 = scmp.eq.s32.totalorder %s516_s13, 1  ;;  %p90_p3 = scmp.eq.s32.totalorder %s276_s14, 1 }
   0x9   : > { %p525_p4 = por %p40_p1, %p39_p0  ;;  %p277_p5 = scmp.ge.s32.totalorder %s477_s12, 1 }
   0xa   : > { %p530_p6 = por %p90_p3, %p39_p0  ;;  %p97_p7 = scmp.lt.s32.totalorder %s477_s12, 3 }
   0xb   : > { %s109_s19 = sshll.u32 %s634_s1, 4  ;;  %s479_s21 = smov [#allocation5]   ;;  %s110_s19 = int_to_ptr.hbm [resolvable:$true] %s109_s19 }
   0xc   : > { %p538_p8 = pnand %p277_p5, %p97_p7  ;;  %s111_s22 = sshll.u32 %s479_s21, 4  ;;  %s112_s22 = int_to_ptr.vmem [resolvable:$true] %s111_s22 }
   0xd   : > { %s548_s23 = sadd.s32 1, %s477_s12   ;;  %s26_s24 = sadd.s32 1, %s473_s11 }
   0xe   : > { %p298_p10 = pneg %p538_p8  ;;  %s23_s25 = ssub.s32 %s477_s12, %s548_s23 }
   0xf   : > { %p24_p12 = scmp.eq.s32.totalorder %s23_s25, 0  ;;  %p33_p13 = scmp.ne.s32.totalorder %s473_s11, %s469_s10 }
  0x10   : > { %p299_p11 = pnand %p298_p10, %p40_p1  ;;  %p34_p0 = scmp.eq.s32.totalorder %s477_s12, 0 }
  0x11   : > { %s557_s26 = scalar_select %p24_p12, %s473_s11, %s26_s24  }
  0x12   : > { %301 = dma.hbm_to_vmem [thread:$0]  (!%p299_p11), %s110_s19, 128, %s112_s22, [#allocation6]  }
  0x13   : > { %p561_p3 = por %p84_p2, %p33_p13  ;;  %p311_p5 = scmp.lt.s32.totalorder %s477_s12, 2 }
  0x14   : > { %s122_s28 = sand.u32 1, %s473_s11   ;;  %s281_s29 = sshll.u32 %s477_s12, 3 }
  0x15   : > { %p35_p7 = por %p34_p0, %p33_p13  ;;  %s280_s30 = sshll.u32 %s122_s28, 3 }
  0x16   : > { %s130_s5 = scalar_lea.hbm %s633_s0, %s281_s29  ;;  %s126_s7 = scalar_lea.vmem [#allocation2], %s280_s30 }
  0x17   : > { %s132_s6 = sshll.u32 %s130_s5, 4  ;;  %s134_s8 = sshll.u32 %s126_s7, 4  ;;  %s133_s6 = int_to_ptr.hbm [resolvable:$true] %s132_s6  ;;  %s135_s8 = int_to_ptr.vmem [resolvable:$true] %s134_s8 }
  0x18   : > { %p571_p10 = pnand %p311_p5, %p35_p7  ;;  %s123_s17 = scalar_lea.sflag [#allocation3], %s122_s28 }
  0x19   : > { %s377_s18 = sshra.s32 %s133_s6, 4  ;;  %s384_s24 = scalar_lea.hbm %s633_s0, 16  ;;  %s378_s18 = int_to_ptr.hbm [resolvable:$true] %s377_s18 }
  0x1a   : > { %s379_s19 = scalar_lea.hbm %s378_s18, 8  ;;  %p381_p11 = pneg %p571_p10 }
  0x1b   : > { %p380_p2 = scmp.ne.s32.totalorder %s378_s18, %s379_s19  ;;  %p385_p0 = scmp.lt.s32.totalorder %s378_s18, %s633_s0 }
  0x1c   : > { %p386_p5 = scmp.lt.s32.totalorder %s384_s24, %s379_s19 }
  0x1d   : > { %p382_p12 = pnand %p381_p11, %p380_p2 }
  0x1e   : > { %p387_p7 = por %p386_p5, %p385_p0 }
  0x1f   : > { %p383_p13 = pneg %p382_p12 }
  0x21   : > { %p388_p9 = pnand %p387_p7, %p383_p13 }
  0x23   : > { %391 = shalt.err (!%p388_p9)
}
  0x24   : > { %305 = dma.hbm_to_vmem [thread:$0]  (!%p571_p10), %s133_s6, 128, %s135_s8, %s123_s17  }
  0x25   : > { %143 = sbr.rel (%p538_p8) target bundleno = 60 (0x3c), region = 28  ;;  %s588_s28 = sand.u32 (!%p538_p8), 1, %s469_s10  }
  0x26   : > { %s283_s30 = sshll.u32 (!%p538_p8), %s588_s28, 3  ;;  %s146_s3 = scalar_lea.sflag (!%p538_p8), [#allocation3], %s588_s28 }
  0x27   : > { %s149_s4 = scalar_lea.vmem (!%p538_p8), [#allocation2], %s283_s30 }
  0x2a   : > { %452 = dma.done.wait (%p525_p4), %s146_s3, 128  }
  0x2b   : > { %454 = vsyncadd (%p525_p4), %s146_s3, 4294967168 }
  0x2c   : > { %456 = dma.done.wait (%p40_p1), [#allocation6], 128  }
  0x2d   : > { %458 = vsyncadd (%p40_p1), [#allocation6], 4294967168  ;;  %s287_s20 = sshll.u32 %s516_s13, 3  ;;  %s175_s8 = scalar_lea.vmem [#allocation7], %s283_s30  ;;  %v176_v0 = vld [vmem:[%s149_s4] sm:$0xff]  ;;  %v177_v1 = vld [vmem:[#allocation5] sm:$0xff] }
  0x2e   : > { %s191_s7 = scalar_lea.hbm %s635_s2, %s287_s20  ;;  %s193_s14 = sshll.u32 %s175_s8, 4  ;;  %v178_v2 = vadd.f32 %v177_v1, %v176_v0  ;;  %s194_s14 = int_to_ptr.vmem [resolvable:$true] %s193_s14 }
  0x2f   : > { %s195_s17 = sshll.u32 %s191_s7, 4  ;;  %s181_s15 = scalar_lea.sflag [#allocation4], %s588_s28  ;;  %s196_s17 = int_to_ptr.hbm [resolvable:$true] %s195_s17 }
  0x30   : > { %179 = vst [vmem:[%s175_s8] sm:$0xff] %v178_v2  ;;  %s421_s18 = sshra.s32 %s196_s17, 4  ;;  %s427_s22 = scalar_lea.hbm %s635_s2, 16  ;;  %s422_s18 = int_to_ptr.hbm [resolvable:$true] %s421_s18 }
  0x31   : > { %s423_s19 = scalar_lea.hbm %s422_s18, 8  ;;  %p428_p9 = scmp.lt.s32.totalorder %s422_s18, %s635_s2 }
  0x32   : > { %p424_p1 = scmp.ne.s32.totalorder %s422_s18, %s423_s19  ;;  %p429_p10 = scmp.lt.s32.totalorder %s427_s22, %s423_s19 }
  0x34   : > { %p425_p4 = pnand %p424_p1, %p561_p3  ;;  %p430_p2 = por %p429_p10, %p428_p9 }
  0x36   : > { %p426_p8 = pneg %p425_p4 }
  0x38   : > { %p431_p11 = pnand %p430_p2, %p426_p8 }
  0x3a   : > { %434 = shalt.err (!%p431_p11)
}
  0x3b   : > { %296 = dma.vmem_to_hbm [thread:$0]  (%p561_p3), %s194_s14, 128, %s196_s17, %s181_s15  }
  0x3c PF: > { %s207_s29 = sand.u32 1, %s465_s9   ;;  %p641_p12 = scmp.ge.s32.totalorder %s477_s12, 2 }
  0x3d   : > { %s208_s28 = scalar_lea.sflag [#allocation4], %s207_s29 }
  0x3e   : > { %p307_p13 = pnand %p641_p12, %p530_p6 }
  0x40   : > { %p308_p0 = pneg %p307_p13 }
  0x42   : > { %460 = dma.done.wait (%p308_p0), %s208_s28, 128  }
  0x43   : > { %462 = vsyncadd (%p308_p0), %s208_s28, 4294967168  ;;  %p16_p5 = scmp.ge.s32.totalorder %s548_s23, 4   ;;  %s642_s9 = smov %s469_s10 }
  0x44   : > { %s643_s10 = smov %s473_s11  ;;  %s644_s11 = smov %s557_s26 }
  0x45   : > { %s645_s12 = smov %s548_s23  ;;  %18 = sbr.rel (!%p16_p5) target bundleno = 6 (0x6), region = 77 }
  0x4a   :  { %214 = vsyncpa [#allocation3], 1 }
  0x4b   :  { %216 = vsyncpa [#allocation3 + $0x1], 1 }
  0x4c   :  { %217 = vsyncpa [#allocation6], 1 }
  0x4d   :  { %218 = vsyncpa [#allocation4], 1 }
  0x4e   :  { %220 = vsyncpa [#allocation4 + $0x1], 1 }

// kernel: graph_convolution.1
= control target key start
LH: loop header
LB: loop body
LE: loop exit
PB: predicated region body
PF: predicated region fallthrough
CT: control target
= control target key end

     0   :  { %vm34_vm0 = vcmask 261120   ;;  %s498_s1 = inlined_call_operand.vmem [shape: f32[32,128], index: 1, kind: input, shape index: {}]   ;;  %s499_s0 = inlined_call_operand.vmem [shape: f32[128,32], index: 0, kind: input, shape index: {}]   ;;  %s500_s2 = inlined_call_operand.vmem [shape: f32[128,128], index: 2, kind: input, shape index: {}]   ;;  %s501_s3 = inlined_call_operand.vmem [shape: f32[128,128], index: 3, kind: output, shape index: {}]  }
   0x1   :  { %v33_v0 = vld [vmem:[%s498_s1 + $0x18] sm:$0xff]  ;;  %v32_v1 = vld [vmem:[%s498_s1 + $0x10] sm:$0xff]  ;;  %v31_v2 = vld [vmem:[%s498_s1 + $0x8] sm:$0xff] }
   0x2   :  { %95 = vmatpush.msra.mxu0 %v33_v0  ;;  %265 = vmatpush.msra.mxu3 %v33_v0  ;;  %v30_v3 = vld [vmem:[%s498_s1] sm:$0xff]  ;;  %v24_v5 = vld [vmem:[%s499_s0 + $0x50] sm:$0xff]  ;;  %v15_v6 = vld [vmem:[%s499_s0 + $0x8] sm:$0xff] }
   0x3   :  { %v14_v4 = vld [vmem:[%s499_s0] sm:$0xff]  ;;  %v25_v7 = vld [vmem:[%s499_s0 + $0x58] sm:$0xff]  ;;  %v16_v8 = vld [vmem:[%s499_s0 + $0x10] sm:$0xff] }
   0x4   :  { %96 = vmatpush.msra.mxu0 %v32_v1  ;;  %266 = vmatpush.msra.mxu3 %v32_v1  ;;  %v26_v9 = vld [vmem:[%s499_s0 + $0x60] sm:$0xff]  ;;  %v17_v10 = vld [vmem:[%s499_s0 + $0x18] sm:$0xff]  ;;  %v27_v11 = vld [vmem:[%s499_s0 + $0x68] sm:$0xff] }
   0x5   :  { %v18_v12 = vld [vmem:[%s499_s0 + $0x20] sm:$0xff]  ;;  %v28_v13 = vld [vmem:[%s499_s0 + $0x70] sm:$0xff]  ;;  %v19_v14 = vld [vmem:[%s499_s0 + $0x28] sm:$0xff] }
   0x6   :  { %97 = vmatpush.msra.mxu0 %v31_v2  ;;  %267 = vmatpush.msra.mxu3 %v31_v2  ;;  %v29_v15 = vld [vmem:[%s499_s0 + $0x78] sm:$0xff]  ;;  %v20_v16 = vld [vmem:[%s499_s0 + $0x30] sm:$0xff]  ;;  %v22_v18 = vld [vmem:[%s499_s0 + $0x40] sm:$0xff] }
   0x7   :  { %v21_v17 = vld [vmem:[%s499_s0 + $0x38] sm:$0xff]  ;;  %v23_v19 = vld [vmem:[%s499_s0 + $0x48] sm:$0xff]  ;;  %v148_v37 = vld [vmem:[%s500_s2] sm:$0xff] }
   0x8   :  { %98 = vmatpush.msra.mxu0 %v30_v3  ;;  %268 = vmatpush.msra.mxu3 %v30_v3  ;;  %v155_v36 = vld [vmem:[%s500_s2 + $0x38] sm:$0xff]  ;;  %v156_v38 = vld [vmem:[%s500_s2 + $0x40] sm:$0xff]  ;;  %v149_v39 = vld [vmem:[%s500_s2 + $0x8] sm:$0xff] }
   0x9   :  { %249 = vmatmul.msk.f32.vlgmr.msra.gmra.mxu0 %vm34_vm0, %v14_v4  ;;  %259 = vmatmul.msk.f32.vlgmr.msra.gmra.mxu3 %vm34_vm0, %v24_v5  ;;  %v162_v40 = vld [vmem:[%s500_s2 + $0x70] sm:$0xff]  ;;  %v157_v41 = vld [vmem:[%s500_s2 + $0x48] sm:$0xff]  ;;  %v163_v43 = vld [vmem:[%s500_s2 + $0x78] sm:$0xff] }
   0xa   :  { %v150_v42 = vld [vmem:[%s500_s2 + $0x10] sm:$0xff]  ;;  %v151_v45 = vld [vmem:[%s500_s2 + $0x18] sm:$0xff]  ;;  %v152_v47 = vld [vmem:[%s500_s2 + $0x20] sm:$0xff] }
   0xb   :  { %v158_v44 = vld [vmem:[%s500_s2 + $0x50] sm:$0xff]  ;;  %v159_v46 = vld [vmem:[%s500_s2 + $0x58] sm:$0xff]  ;;  %v160_v48 = vld [vmem:[%s500_s2 + $0x60] sm:$0xff] }
   0xc   :  { %v153_v49 = vld [vmem:[%s500_s2 + $0x28] sm:$0xff]  ;;  %v154_v51 = vld [vmem:[%s500_s2 + $0x30] sm:$0xff] }
   0xd   :  { %v161_v50 = vld [vmem:[%s500_s2 + $0x68] sm:$0xff] }
  0x11   :  { %250 = vmatmul.msk.f32.gmra.mxu0 %vm34_vm0, %v15_v6  ;;  %260 = vmatmul.msk.f32.gmra.mxu3 %vm34_vm0, %v25_v7 }
  0x19   :  { %251 = vmatmul.msk.f32.gmra.mxu0 %vm34_vm0, %v16_v8  ;;  %261 = vmatmul.msk.f32.gmra.mxu3 %vm34_vm0, %v26_v9 }
  0x21   :  { %252 = vmatmul.msk.f32.gmra.mxu0 %vm34_vm0, %v17_v10  ;;  %262 = vmatmul.msk.f32.gmra.mxu3 %vm34_vm0, %v27_v11 }
  0x29   :  { %253 = vmatmul.msk.f32.gmra.mxu0 %vm34_vm0, %v18_v12  ;;  %263 = vmatmul.msk.f32.gmra.mxu3 %vm34_vm0, %v28_v13 }
  0x31   :  { %254 = vmatmul.msk.f32.gmra.mxu0 %vm34_vm0, %v19_v14  ;;  %264 = vmatmul.msk.f32.gmra.mxu3 %vm34_vm0, %v29_v15 }
  0x39   :  { %255 = vmatmul.msk.f32.gmra.mxu0 %vm34_vm0, %v20_v16 }
  0x41   :  { %256 = vmatmul.msk.f32.gmra.mxu0 %vm34_vm0, %v21_v17 }
  0x49   :  { %257 = vmatmul.msk.f32.gmra.mxu0 %vm34_vm0, %v22_v18 }
  0x51   :  { %258 = vmatmul.msk.f32.gmra.mxu0 %vm34_vm0, %v23_v19 }
  0x86   :  { %v397_v20 = vpop.f32.mrf.mxu0 }
  0x8c   :  { %v130_v21 = vpop.f32.mrf.mxu3 }
  0x8e   :  { %v103_v22 = vpop.f32.mrf.mxu0 }
  0x94   :  { %v133_v23 = vpop.f32.mrf.mxu3 }
  0x96   :  { %v106_v24 = vpop.f32.mrf.mxu0 }
  0x9c   :  { %v136_v25 = vpop.f32.mrf.mxu3 }
  0x9e   :  { %v109_v26 = vpop.f32.mrf.mxu0 }
  0xa4   :  { %v139_v27 = vpop.f32.mrf.mxu3 }
  0xa6   :  { %v112_v28 = vpop.f32.mrf.mxu0 }
  0xac   :  { %v142_v29 = vpop.f32.mrf.mxu3 }
  0xae   :  { %v115_v30 = vpop.f32.mrf.mxu0 }
  0xb4   :  { %v145_v31 = vpop.f32.mrf.mxu3 }
  0xb5   :  { %164 = vmatpush.msra.mxu1 %v145_v31  ;;  %269 = vmatpush.msra.mxu2 %v145_v31 }
  0xb6   :  { %270 = vmatpush.msrb.mxu3 %v145_v31  ;;  %v118_v32 = vpop.f32.mrf.mxu0 }
  0xb7   :  { %165 = vmatpush.msra.mxu1 %v142_v29  ;;  %271 = vmatpush.msra.mxu2 %v142_v29 }
  0xb8   :  { %272 = vmatpush.msrb.mxu3 %v142_v29 }
  0xb9   :  { %166 = vmatpush.msra.mxu1 %v139_v27  ;;  %273 = vmatpush.msra.mxu2 %v139_v27 }
  0xba   :  { %274 = vmatpush.msrb.mxu3 %v139_v27 }
  0xbb   :  { %167 = vmatpush.msra.mxu1 %v136_v25  ;;  %275 = vmatpush.msra.mxu2 %v136_v25 }
  0xbc   :  { %276 = vmatpush.msrb.mxu3 %v136_v25 }
  0xbd   :  { %168 = vmatpush.msra.mxu1 %v133_v23  ;;  %277 = vmatpush.msra.mxu2 %v133_v23 }
  0xbe   :  { %278 = vmatpush.msrb.mxu3 %v133_v23  ;;  %v121_v33 = vpop.f32.mrf.mxu0 }
  0xbf   :  { %169 = vmatpush.msra.mxu1 %v130_v21  ;;  %279 = vmatpush.msra.mxu2 %v130_v21 }
  0xc0   :  { %280 = vmatpush.msrb.mxu3 %v130_v21 }
  0xc6   :  { %v124_v34 = vpop.f32.mrf.mxu0 }
  0xce   :  { %v127_v35 = vpop.f32.mrf.mxu0 }
  0xcf   :  { %170 = vmatpush.msra.mxu1 %v127_v35  ;;  %281 = vmatpush.msra.mxu2 %v127_v35 }
  0xd0   :  { %282 = vmatpush.msrb.mxu3 %v127_v35 }
  0xd1   :  { %171 = vmatpush.msra.mxu1 %v124_v34  ;;  %283 = vmatpush.msra.mxu2 %v124_v34 }
  0xd2   :  { %284 = vmatpush.msrb.mxu3 %v124_v34 }
  0xd3   :  { %172 = vmatpush.msra.mxu1 %v121_v33  ;;  %285 = vmatpush.msra.mxu2 %v121_v33 }
  0xd4   :  { %286 = vmatpush.msrb.mxu3 %v121_v33 }
  0xd5   :  { %173 = vmatpush.msra.mxu1 %v118_v32  ;;  %287 = vmatpush.msra.mxu2 %v118_v32 }
  0xd6   :  { %288 = vmatpush.msrb.mxu3 %v118_v32 }
  0xd7   :  { %174 = vmatpush.msra.mxu1 %v115_v30  ;;  %289 = vmatpush.msra.mxu2 %v115_v30 }
  0xd8   :  { %290 = vmatpush.msrb.mxu3 %v115_v30 }
  0xd9   :  { %175 = vmatpush.msra.mxu1 %v112_v28  ;;  %291 = vmatpush.msra.mxu2 %v112_v28 }
  0xda   :  { %292 = vmatpush.msrb.mxu3 %v112_v28 }
  0xdb   :  { %176 = vmatpush.msra.mxu1 %v109_v26  ;;  %293 = vmatpush.msra.mxu2 %v109_v26 }
  0xdc   :  { %294 = vmatpush.msrb.mxu3 %v109_v26 }
  0xdd   :  { %177 = vmatpush.msra.mxu1 %v106_v24  ;;  %295 = vmatpush.msra.mxu2 %v106_v24 }
  0xde   :  { %296 = vmatpush.msrb.mxu3 %v106_v24 }
  0xdf   :  { %178 = vmatpush.msra.mxu1 %v103_v22  ;;  %297 = vmatpush.msra.mxu2 %v103_v22 }
  0xe0   :  { %298 = vmatpush.msrb.mxu3 %v103_v22 }
  0xe1   :  { %179 = vmatpush.msra.mxu1 %v397_v20  ;;  %299 = vmatpush.msra.mxu2 %v397_v20 }
  0xe2   :  { %300 = vmatpush.msrb.mxu3 %v397_v20  ;;  %201 = vmatmul.f32.vlgmr.msra.gmra.mxu2 %v155_v36 }
  0xe3   :  { %180 = vmatmul.f32.vlgmr.msra.gmra.mxu1 %v148_v37  ;;  %222 = vmatmul.f32.vlgmr.msrb.gmra.mxu3 %v162_v40 }
  0xea   :  { %204 = vmatmul.f32.gmra.mxu2 %v156_v38 }
  0xeb   :  { %183 = vmatmul.f32.gmra.mxu1 %v149_v39  ;;  %225 = vmatmul.f32.gmra.mxu3 %v163_v43 }
  0xf2   :  { %207 = vmatmul.f32.gmra.mxu2 %v157_v41 }
  0xf3   :  { %186 = vmatmul.f32.gmra.mxu1 %v150_v42 }
  0xfa   :  { %210 = vmatmul.f32.gmra.mxu2 %v158_v44 }
  0xfb   :  { %189 = vmatmul.f32.gmra.mxu1 %v151_v45 }
 0x102   :  { %213 = vmatmul.f32.gmra.mxu2 %v159_v46 }
 0x103   :  { %192 = vmatmul.f32.gmra.mxu1 %v152_v47 }
 0x10a   :  { %216 = vmatmul.f32.gmra.mxu2 %v160_v48 }
 0x10b   :  { %195 = vmatmul.f32.gmra.mxu1 %v153_v49 }
 0x112   :  { %219 = vmatmul.f32.gmra.mxu2 %v161_v50 }
 0x113   :  { %198 = vmatmul.f32.gmra.mxu1 %v154_v51 }
 0x160   :  { %v181_v52 = vpop.f32.mrf.mxu1 }
 0x161   :  { %229 = vst [vmem:[%s501_s3] sm:$0xff] %v181_v52 }
 0x165   :  { %v202_v53 = vpop.f32.mrf.mxu2 }
 0x166   :  { %236 = vst [vmem:[%s501_s3 + $0x38] sm:$0xff] %v202_v53  ;;  %v223_v56 = vpop.f32.mrf.mxu3 }
 0x167   :  { %243 = vst [vmem:[%s501_s3 + $0x70] sm:$0xff] %v223_v56 }
 0x168   :  { %v184_v54 = vpop.f32.mrf.mxu1 }
 0x169   :  { %230 = vst [vmem:[%s501_s3 + $0x8] sm:$0xff] %v184_v54 }
 0x16d   :  { %v205_v55 = vpop.f32.mrf.mxu2 }
 0x16e   :  { %237 = vst [vmem:[%s501_s3 + $0x40] sm:$0xff] %v205_v55  ;;  %v226_v59 = vpop.f32.mrf.mxu3 }
 0x16f   :  { %244 = vst [vmem:[%s501_s3 + $0x78] sm:$0xff] %v226_v59 }
 0x170   :  { %v187_v57 = vpop.f32.mrf.mxu1 }
 0x171   :  { %231 = vst [vmem:[%s501_s3 + $0x10] sm:$0xff] %v187_v57 }
 0x175   :  { %v208_v58 = vpop.f32.mrf.mxu2 }
 0x176   :  { %238 = vst [vmem:[%s501_s3 + $0x48] sm:$0xff] %v208_v58 }
 0x178   :  { %v190_v60 = vpop.f32.mrf.mxu1 }
 0x179   :  { %232 = vst [vmem:[%s501_s3 + $0x18] sm:$0xff] %v190_v60 }
 0x17d   :  { %v211_v61 = vpop.f32.mrf.mxu2 }
 0x17e   :  { %239 = vst [vmem:[%s501_s3 + $0x50] sm:$0xff] %v211_v61 }
 0x180   :  { %v193_v62 = vpop.f32.mrf.mxu1 }
 0x181   :  { %233 = vst [vmem:[%s501_s3 + $0x20] sm:$0xff] %v193_v62 }
 0x185   :  { %v214_v63 = vpop.f32.mrf.mxu2 }
 0x186   :  { %240 = vst [vmem:[%s501_s3 + $0x58] sm:$0xff] %v214_v63 }
 0x188   :  { %v196_v0 = vpop.f32.mrf.mxu1 }
 0x189   :  { %234 = vst [vmem:[%s501_s3 + $0x28] sm:$0xff] %v196_v0 }
 0x18d   :  { %v217_v1 = vpop.f32.mrf.mxu2 }
 0x18e   :  { %241 = vst [vmem:[%s501_s3 + $0x60] sm:$0xff] %v217_v1 }
 0x190   :  { %v199_v2 = vpop.f32.mrf.mxu1 }
 0x191   :  { %235 = vst [vmem:[%s501_s3 + $0x30] sm:$0xff] %v199_v2 }
 0x195   :  { %v220_v3 = vpop.f32.mrf.mxu2 }
 0x196   :  { %242 = vst [vmem:[%s501_s3 + $0x68] sm:$0xff] %v220_v3 }

</bundles_post_ra>
